<compile_context>
chip_gen: v7x
topology: tpu7x:2x2x1
jax: 0.10.0
libtpu: 0.0.40
codegen_flags: <defaults>
</compile_context>

<pallas_src>
import functools

import jax
import jax.numpy as jnp
from jax.experimental import pallas as pl
from jax.experimental.pallas import tpu as pltpu

_LANE = 128


def _round_up(x, m):
    return ((x + m - 1) // m) * m


def _nconv_kernel(x_ref, a_ref, o_ref, acc_ref):
    # x_ref: (1, TV, TN)   a_ref: (1, D_pad, TV)   o_ref: (1, D_pad, TN)
    # acc_ref: (D_pad, TN) f32 accumulator, resident across the V axis.
    k = pl.program_id(2)

    @pl.when(k == 0)
    def _init():
        acc_ref[...] = jnp.zeros_like(acc_ref)

    # Canonical (M, K) x (K, N) MXU matmul, f32 accumulation.
    acc_ref[...] += jnp.dot(
        a_ref[0], x_ref[0], preferred_element_type=jnp.float32
    )

    @pl.when(k == pl.num_programs(2) - 1)
    def _finalize():
        o_ref[0] = acc_ref[...].astype(o_ref.dtype)


def _vmem_budget_and_limit():
    """Per-generation VMEM sizing (v5e/v6e: 128 MiB, v7x: 64 MiB per core)."""
    try:
        phys = int(pltpu.get_tpu_info().vmem_capacity_bytes)
    except Exception:
        phys = 64 * 1024 * 1024  # conservative fallback (v7x per-core VMEM)
    phys = min(max(phys, 32 * 1024 * 1024), 128 * 1024 * 1024)
    return int(phys * 0.55), int(phys * 0.75)


@functools.partial(jax.jit, static_argnames=("lane_dense_out", "vmem_budget_bytes"))
def nconv(x, A, *, lane_dense_out=False, vmem_budget_bytes=None):
    """Pallas implementation of the PyTorch `nconv.forward`.

    x: (B, C, V, L)
    A: (V, W) shared square adjacency (2-D)  -> einsum('ncvl,vw->ncwl')
       (B, V, D) per-batch adjacency (3-D)   -> einsum('bfnl,bnd->bfdl')
    returns (B, C, D, L), or (B, D, C*L) when lane_dense_out=True.
    """
    B, C, V, L = x.shape
    out_dtype = jnp.result_type(x.dtype, A.dtype)

    # Rank-based dispatch (robust version of the PyTorch shape[0]!=shape[1] test).
    if A.ndim == 3:
        At = jnp.swapaxes(A, 1, 2)          # (B, D, V)
        a_batched = True
    else:
        At = A.T[None]                      # (1, D, V) shared adjacency
        a_batched = False
    D = At.shape[1]
    if At.dtype != out_dtype:
        At = At.astype(out_dtype)
    if x.dtype != out_dtype:
        x = x.astype(out_dtype)

    itemsize = jnp.dtype(out_dtype).itemsize
    sublane = 8 if itemsize >= 4 else (16 if itemsize == 2 else 32)
    D_pad = _round_up(D, sublane)           # unragged output/A sublane dim

    N = C * L
    n128 = _round_up(N, _LANE)

    budget, vmem_limit = _vmem_budget_and_limit()
    if vmem_budget_bytes is not None:
        budget = int(vmem_budget_bytes)

    def footprint(tv, tn):
        # double-buffered x / A / out blocks + resident f32 accumulator
        return (2 * tv * tn + 2 * D_pad * tv + 2 * D_pad * tn) * itemsize \
            + D_pad * tn * 4

    # --- V (contraction) tiling: only when the full-V column cannot fit. ----
    TV = V
    while TV > _LANE and footprint(TV, min(n128, 4 * _LANE)) > budget:
        TV = _round_up(TV // 2, _LANE)      # multiple of 128 (A-block lane dim)

    # --- N tiling: start at the largest lane tile the budget allows. --------
    TN = n128
    while TN > _LANE and footprint(TV, TN) > budget:
        TN = _round_up(TN // 2, _LANE)
    # Last-resort rebalance for extreme D_pad*TV (keeps the kernel compilable).
    while TV > _LANE and footprint(TV, TN) > budget:
        TV = _round_up(TV // 2, _LANE)

    # v7x has two TensorCores: keep >=2 'parallel' grid steps when possible.
    if B == 1 and TN >= n128 and n128 > _LANE:
        TN = _round_up((N + 1) // 2, _LANE)

    V_pad = _round_up(V, TV)
    N_pad = _round_up(N, TN)
    num_vt = V_pad // TV
    num_nt = N_pad // TN

    # Lane-dense relayout (single XLA transpose; pad fuses into it under jit).
    x3 = jnp.transpose(x, (0, 2, 1, 3)).reshape(B, V, N)
    if V_pad != V or N_pad != N:
        x3 = jnp.pad(x3, ((0, 0), (0, V_pad - V), (0, N_pad - N)))
    if D_pad != D or V_pad != V:
        At = jnp.pad(At, ((0, 0), (0, D_pad - D), (0, V_pad - V)))

    a_index_map = (lambda b, j, k: (b, 0, k)) if a_batched \
        else (lambda b, j, k: (0, 0, k))

    out3 = pl.pallas_call(
        _nconv_kernel,
        out_shape=jax.ShapeDtypeStruct((B, D_pad, N_pad), out_dtype),
        grid=(B, num_nt, num_vt),           # reduction axis (V) innermost
        in_specs=[
            pl.BlockSpec((1, TV, TN), lambda b, j, k: (b, k, j)),
            pl.BlockSpec((1, D_pad, TV), a_index_map),
        ],
        out_specs=pl.BlockSpec((1, D_pad, TN), lambda b, j, k: (b, 0, j)),
        scratch_shapes=[pltpu.VMEM((D_pad, TN), jnp.float32)],
        compiler_params=pltpu.CompilerParams(
            dimension_semantics=("parallel", "parallel", "arbitrary"),
            vmem_limit_bytes=vmem_limit,
        ),
    )(x3, At)

    out = out3[:, :D, :N]
    if lane_dense_out:
        # TODO(synk): consumers that accept the (B, D, C*L) layout directly
        # skip the transpose below and save one HBM round trip of the output.
        return out
    # Back to the PyTorch (B, C, D, L) layout; slice+reshape+transpose fuse
    # into a single XLA copy under jit (`.contiguous()` is implicit).
    return jnp.transpose(out.reshape(B, D, C, L), (0, 2, 1, 3))


if __name__ == "__main__":
    key = jax.random.PRNGKey(0)
    kx, ka_sq, ka_b, kx2, ka2 = jax.random.split(key, 5)

    B, C, V, L = 2, 4, 16, 8
    D = 12

    x = jax.random.normal(kx, (B, C, V, L), dtype=jnp.float32)

    # Path 1: square shared adjacency  ('ncvl,vw->ncwl')
    A_sq = jax.random.normal(ka_sq, (V, V), dtype=jnp.float32)
    out_sq = jax.block_until_ready(nconv(x, A_sq))
    ref_sq = jnp.einsum("ncvl,vw->ncwl", x, A_sq)
    assert out_sq.shape == (B, C, V, L)
    assert jnp.allclose(out_sq, ref_sq, atol=1e-4, rtol=1e-4)

    # Path 2: batched adjacency ('bfnl,bnd->bfdl'); ragged D=12 exercises the
    # sublane padding of D.
    A_b = jax.random.normal(ka_b, (B, V, D), dtype=jnp.float32)
    out_b = jax.block_until_ready(nconv(x, A_b))
    ref_b = jnp.einsum("bfnl,bnd->bfdl", x, A_b)
    assert out_b.shape == (B, C, D, L)
    assert jnp.allclose(out_b, ref_b, atol=1e-4, rtol=1e-4)

    # Path 3: larger graph with a deliberately tiny VMEM budget to exercise the
    # V-reduction (accumulator) grid axis plus the N/V/D padding paths.
    B2, C2, V2, L2, D2 = 2, 4, 256, 8, 10
    x2 = jax.random.normal(kx2, (B2, C2, V2, L2), dtype=jnp.float32)
    A2 = jax.random.normal(ka2, (B2, V2, D2), dtype=jnp.float32)
    out2 = jax.block_until_ready(nconv(x2, A2, vmem_budget_bytes=192 * 1024))
    ref2 = jnp.einsum("bfnl,bnd->bfdl", x2, A2)
    assert out2.shape == (B2, C2, D2, L2)
    assert jnp.allclose(out2, ref2, atol=1e-3, rtol=1e-3)

    print("KERNEL_OK")
</pallas_src>

<mosaic_0001>
module attributes {stable_mosaic.version = 11 : i64} {
  func.func @_nconv_kernel(%arg0: i32, %arg1: i32, %arg2: i32, %arg3: memref<1x16x128xf32, #tpu.memory_space<vmem>>, %arg4: memref<1x16x16xf32, #tpu.memory_space<vmem>>, %arg5: memref<1x16x128xf32, #tpu.memory_space<vmem>>, %arg6: memref<16x128xf32, #tpu.memory_space<vmem>>) attributes {dimension_semantics = [#tpu.dimension_semantics<parallel>, #tpu.dimension_semantics<parallel>, #tpu.dimension_semantics<arbitrary>], iteration_bounds = array<i64: 2, 1, 1>, scalar_prefetch = 0 : i64, scratch_operands = 1 : i64, tpu.core_type = #tpu.core_type<tc>, window_params = [{transform_indices = @transform_0, window_bounds = array<i64: 1, 16, 128>}, {transform_indices = @transform_1, window_bounds = array<i64: 1, 16, 16>}, {transform_indices = @transform_2, window_bounds = array<i64: 1, 16, 128>}]} {
    %c0_i32 = arith.constant 0 : i32
    %0 = arith.cmpi eq, %arg2, %c0_i32 : i32
    %1 = arith.extui %0 : i1 to i32
    %c0_i32_0 = arith.constant 0 : i32
    %2 = arith.cmpi ne, %1, %c0_i32_0 : i32
    scf.if %2 {
      %cst_12 = arith.constant 0.000000e+00 : f32
      %14 = vector.broadcast %cst_12 : f32 to vector<16x128xf32>
      %c0_13 = arith.constant 0 : index
      %c0_14 = arith.constant 0 : index
      %15 = vector.load %arg6[%c0_13, %c0_14] : memref<16x128xf32, #tpu.memory_space<vmem>>, vector<16x128xf32>
      tpu.vector_store %arg6[%c0_13, %c0_14], %14 {strides = array<i32>} : memref<16x128xf32, #tpu.memory_space<vmem>>, vector<16x128xf32>,
    } else {
    }
    %c0 = arith.constant 0 : index
    %c0_1 = arith.constant 0 : index
    %3 = vector.load %arg6[%c0, %c0_1] : memref<16x128xf32, #tpu.memory_space<vmem>>, vector<16x128xf32>
    %c0_2 = arith.constant 0 : index
    %c0_3 = arith.constant 0 : index
    %c0_4 = arith.constant 0 : index
    %4 = vector.load %arg4[%c0_2, %c0_3, %c0_4] : memref<1x16x16xf32, #tpu.memory_space<vmem>>, vector<1x16x16xf32>
    %5 = vector.shape_cast %4 : vector<1x16x16xf32> to vector<16x16xf32>
    %c0_5 = arith.constant 0 : index
    %c0_6 = arith.constant 0 : index
    %c0_7 = arith.constant 0 : index
    %6 = vector.load %arg3[%c0_5, %c0_6, %c0_7] : memref<1x16x128xf32, #tpu.memory_space<vmem>>, vector<1x16x128xf32>
    %7 = vector.shape_cast %6 : vector<1x16x128xf32> to vector<16x128xf32>
    %cst = arith.constant dense<0.000000e+00> : vector<16x128xf32>
    %8 = tpu.matmul %5, %7, %cst {dimension_numbers = #tpu.dot_dimension_numbers<[1], [0], [0], [1], [0, 0, 1, 1], [], []>} : vector<16x16xf32>, vector<16x128xf32>, vector<16x128xf32> -> vector<16x128xf32>
    %9 = arith.addf %3, %8 : vector<16x128xf32>
    %c0_8 = arith.constant 0 : index
    %c0_9 = arith.constant 0 : index
    %10 = vector.load %arg6[%c0_8, %c0_9] : memref<16x128xf32, #tpu.memory_space<vmem>>, vector<16x128xf32>
    tpu.vector_store %arg6[%c0_8, %c0_9], %9 {strides = array<i32>} : memref<16x128xf32, #tpu.memory_space<vmem>>, vector<16x128xf32>,
    %c0_i32_10 = arith.constant 0 : i32
    %11 = arith.cmpi eq, %arg2, %c0_i32_10 : i32
    %12 = arith.extui %11 : i1 to i32
    %c0_i32_11 = arith.constant 0 : i32
    %13 = arith.cmpi ne, %12, %c0_i32_11 : i32
    scf.if %13 {
      %c0_12 = arith.constant 0 : index
      %c0_13 = arith.constant 0 : index
      %14 = vector.load %arg6[%c0_12, %c0_13] : memref<16x128xf32, #tpu.memory_space<vmem>>, vector<16x128xf32>
      %c0_14 = arith.constant 0 : index
      %c0_15 = arith.constant 0 : index
      %c0_16 = arith.constant 0 : index
      %15 = vector.load %arg5[%c0_14, %c0_15, %c0_16] : memref<1x16x128xf32, #tpu.memory_space<vmem>>, vector<1x16x128xf32>
      %16 = vector.shape_cast %15 : vector<1x16x128xf32> to vector<16x128xf32>
      %17 = vector.shape_cast %14 : vector<16x128xf32> to vector<1x16x128xf32>
      tpu.vector_store %arg5[%c0_14, %c0_15, %c0_16], %17 {strides = array<i32>} : memref<1x16x128xf32, #tpu.memory_space<vmem>>, vector<1x16x128xf32>,
    } else {
    }
    return
  }
  func.func @transform_0(%arg0: i32, %arg1: i32, %arg2: i32) -> (i32, i32, i32) {
    %c0_i32 = arith.constant 0 : i32
    return %arg0, %arg2, %arg1 : i32, i32, i32
  }
  func.func @transform_1(%arg0: i32, %arg1: i32, %arg2: i32) -> (i32, i32, i32) {
    %c0_i32 = arith.constant 0 : i32
    %c0_i32_0 = arith.constant 0 : i32
    %c0_i32_1 = arith.constant 0 : i32
    return %c0_i32, %c0_i32_0, %arg2 : i32, i32, i32
  }
  func.func @transform_2(%arg0: i32, %arg1: i32, %arg2: i32) -> (i32, i32, i32) {
    %c0_i32 = arith.constant 0 : i32
    %c0_i32_0 = arith.constant 0 : i32
    return %arg0, %c0_i32, %arg1 : i32, i32, i32
  }
}

</mosaic_0001>

<bundles_post_ra>
// kernel: nconv.1
= control target key start
LH: loop header
LB: loop body
LE: loop exit
PB: predicated region body
PF: predicated region fallthrough
CT: control target
= control target key end

     0   :  { %s519_s9 = smov 0   ;;  %s521_s10 = smov 0   ;;  %s555_s0 = inlined_call_operand.vmem [shape: f32[2,16,128], index: 0, kind: input, shape index: {}]   ;;  %s556_s1 = inlined_call_operand.vmem [shape: f32[1,16,16], index: 1, kind: input, shape index: {}]   ;;  %s557_s2 = inlined_call_operand.vmem [shape: f32[2,16,128], index: 2, kind: output, shape index: {}]  }
   0x1   :  { %s523_s11 = smov 0  }
   0x2 LB: > { %s31_s12 = sadd.s32 1, %s498_s10  ;;  %p430_p0 = scmp.ge.s32.totalorder %s502_s11, 1  ;;  %s502_s11 = sphi %s523_s11, %s12_s11   ;;  %s498_s10 = sphi %s521_s10, %s559_s10   ;;  %s494_s9 = sphi %s519_s9, %s558_s9  }
   0x3   : > { %p33_p1 = scmp.ge.s32.totalorder %s31_s12, 2  ;;  %p154_p2 = scmp.lt.s32.totalorder %s502_s11, 3 }
   0x5   : > { %s561_s12 = smov (%p33_p1, %s31_s12), 0  ;;  %p155_p3 = pnand %p430_p0, %p154_p2 }
   0x6   : > { %p191_p4 = scmp.lt.s32.totalorder (!%p155_p3), %s494_s9, 1  ;;  %v223_v0 = vld [vmem:[%s556_s1] sm:$0xff] (!%p155_p3)  ;;  %vm227_vm0 = vcmask (!%p155_p3), 130048   ;;  %v224_v4 = vld [vmem:[%s556_s1 + $0x8] sm:$0xff] (!%p155_p3) }
   0x7   : > { %158 = sbr.rel (%p155_p3) target bundleno = 238 (0xee), region = 28  ;;  %449 = vmatprep.mubr.msk.f32.mxu0 (!%p155_p3), %vm227_vm0, %v223_v0 }
   0xe   : > { %s563_s9 = smov (!%p191_p4, %s494_s9), 1 }
   0xf   : > { %s439_s15 = sshll.u32 %s563_s9, 4 }
  0x10   : > { %s201_s18 = scalar_lea.vmem %s555_s0, %s439_s15  ;;  %s214_s23 = scalar_lea.vmem %s557_s2, %s439_s15 }
  0x11   : > { %v225_v1 = vld [vmem:[%s201_s18] sm:$0xff]  ;;  %v226_v2 = vld [vmem:[%s201_s18 + $0x8] sm:$0xff] }
  0x12   : > { %v452_v3 = vpack.c.bf16 %v226_v2, %v225_v1 }
  0x14   : > { %453 = vmatprep.subr.bf16.mxu0 %v452_v3 }
  0x15   : > { %455 = vmatpush3.bf16.msra.mxu0 %v452_v3 }
  0x18   : > { %450 = vmatmul.mubr.msk.f32.vlgmr.msra.gmra.mrb[0].mxu0 %vm227_vm0, %v224_v4 }
  0xeb   : > { %v451_v5 = vpop.f32.mrb[0].mxu0 }
  0xec   : > { %319 = vst [vmem:[%s214_s23 + $0x8] sm:$0xff] %v451_v5  ;;  %v300_v6 = vpop.f32.mrb[1].mxu0 }
  0xed   : > { %318 = vst [vmem:[%s214_s23] sm:$0xff] %v300_v6 }
  0xee PF: > { %s12_s11 = sadd.s32 1, %s502_s11   ;;  %s558_s9 = smov %s498_s10 }
  0xef   : > { %p9_p5 = scmp.ge.s32.totalorder %s12_s11, 4   ;;  %s559_s10 = smov %s561_s12 }
  0xf1   :  { %11 = sbr.rel (!%p9_p5) target bundleno = 2 (0x2), region = 69 }

</bundles_post_ra>
